<compile_context>
chip_gen: v5e
topology: v5e:2x2
jax: 0.10.0
libtpu: 0.0.40
codegen_flags: <defaults>
</compile_context>

<pallas_src>
import jax
import jax.numpy as jnp
import numpy as np
from jax.experimental import pallas as pl
from jax.experimental.pallas import tpu as pltpu


def _round_up(x, m):
    return ((x + m - 1) // m) * m


# ----------------------------- Pallas kernel -------------------------------
def actor_linear_kernel(x_ref, w_ref, b_ref, o_ref):
    # x: [tb, K]  w: [K, N]  b: [1, N]  -> o: [tb, N]
    acc = jnp.dot(x_ref[...], w_ref[...], preferred_element_type=jnp.float32)
    o_ref[...] = (acc + b_ref[...]).astype(o_ref.dtype)


# ------------------------------- wrapper ------------------------------------
def actor_forward(state, w, b, *, batch_tile=1024, out_dtype=None):
    """state: [B, state_dim].
    w: [state_dim, action_dim] (transpose of PyTorch's nn.Linear weight, built
       once at init time).
    b: [1, action_dim]."""
    B, K = state.shape
    Kw, N = w.shape
    assert Kw == K
    if b.ndim == 1:
        b = b[None, :]
    out_dtype = state.dtype if out_dtype is None else out_dtype

    # Pad batch only to a sublane multiple (8); the grid may be ragged.
    B8 = _round_up(B, 8)
    if B8 != B:
        state = jnp.pad(state, ((0, B8 - B), (0, 0)))

    # Batch tile: cap at `batch_tile`, but aim for >= 2 grid steps so the
    # "parallel" axis can shard across v7x's two TensorCores.
    tb = min(batch_tile, max(8, _round_up(pl.cdiv(B8, 2), 8)))
    grid = (pl.cdiv(B8, tb),)

    out_itemsize = jnp.dtype(out_dtype).itemsize
    bytes_accessed = (B8 * K * state.dtype.itemsize
                      + K * N * w.dtype.itemsize
                      + N * b.dtype.itemsize
                      + B8 * N * out_itemsize)

    out = pl.pallas_call(
        actor_linear_kernel,
        out_shape=jax.ShapeDtypeStruct((B8, N), out_dtype),
        grid_spec=pltpu.PrefetchScalarGridSpec(
            num_scalar_prefetch=0,
            grid=grid,
            in_specs=[
                # Activations: tiled over batch; last block dim == full K.
                pl.BlockSpec((tb, K), lambda i: (i, 0)),
                # Weight / bias: grid-invariant (constant index_map), stay
                # resident in VMEM across all batch tiles.
                pl.BlockSpec((K, N), lambda i: (0, 0)),
                pl.BlockSpec((1, N), lambda i: (0, 0)),
            ],
            out_specs=pl.BlockSpec((tb, N), lambda i: (i, 0)),
        ),
        compiler_params=pltpu.CompilerParams(
            dimension_semantics=("parallel",),   # shard batch tiles across TCs
        ),
        cost_estimate=pl.CostEstimate(
            flops=2 * B8 * K * N,
            transcendentals=0,
            bytes_accessed=bytes_accessed,
        ),
    )(state, w, b)

    return out[:B] if B8 != B else out


# ------------------------ PyTorch-parity param init -------------------------
def init_actor_params(key, state_dim, action_dim):
    # nn.Linear default: weight, bias ~ U(-1/sqrt(fan_in), 1/sqrt(fan_in)).
    # Built once in the kernel-ready layout (no per-call transpose/pad/cast).
    k_w, k_b = jax.random.split(key)
    bound = 1.0 / float(np.sqrt(state_dim))
    w_torch = jax.random.uniform(k_w, (action_dim, state_dim), jnp.float32,
                                 -bound, bound)           # [out, in]
    w = w_torch.T                                         # stored as [in, out]
    b = jax.random.uniform(k_b, (1, action_dim), jnp.float32, -bound, bound)
    return w, b


def actor_forward_ref(state, w, b):
    return state @ w + b


# --------------------------------- main -------------------------------------
if __name__ == "__main__":
    key = jax.random.PRNGKey(0)
    k_x, k_p = jax.random.split(key)

    batch, state_dim, action_dim = 64, 8, 4
    state = jax.random.normal(k_x, (batch, state_dim), jnp.float32)
    w, b = init_actor_params(k_p, state_dim, action_dim)

    out = jax.block_until_ready(actor_forward(state, w, b))

    ref = actor_forward_ref(state, w, b)
    # f32 params; tolerance covers the TPU MXU's default matmul precision.
    np.testing.assert_allclose(np.asarray(out), np.asarray(ref),
                               rtol=1e-2, atol=1e-2)
    assert out.shape == (batch, action_dim)

    print("KERNEL_OK")
</pallas_src>

<mosaic_0001>
module attributes {stable_mosaic.version = 11 : i64} {
  func.func @actor_linear_kernel(%arg0: i32, %arg1: memref<32x8xf32, #tpu.memory_space<vmem>>, %arg2: memref<8x4xf32, #tpu.memory_space<vmem>>, %arg3: memref<1x4xf32, #tpu.memory_space<vmem>>, %arg4: memref<32x4xf32, #tpu.memory_space<vmem>>) attributes {dimension_semantics = [#tpu.dimension_semantics<parallel>], iteration_bounds = array<i64: 2>, scalar_prefetch = 0 : i64, scratch_operands = 0 : i64, tpu.core_type = #tpu.core_type<tc>, window_params = [{transform_indices = @transform_0, window_bounds = array<i64: 32, 8>}, {pipeline_mode = #tpu.pipeline_mode<synchronous>, transform_indices = @transform_1, window_bounds = array<i64: 8, 4>}, {pipeline_mode = #tpu.pipeline_mode<synchronous>, transform_indices = @transform_2, window_bounds = array<i64: 1, 4>}, {transform_indices = @transform_3, window_bounds = array<i64: 32, 4>}]} {
    %c0 = arith.constant 0 : index
    %c0_0 = arith.constant 0 : index
    %0 = vector.load %arg1[%c0, %c0_0] : memref<32x8xf32, #tpu.memory_space<vmem>>, vector<32x8xf32>
    %c0_1 = arith.constant 0 : index
    %c0_2 = arith.constant 0 : index
    %1 = vector.load %arg2[%c0_1, %c0_2] : memref<8x4xf32, #tpu.memory_space<vmem>>, vector<8x4xf32>
    %cst = arith.constant dense<0.000000e+00> : vector<32x4xf32>
    %2 = tpu.matmul %0, %1, %cst {dimension_numbers = #tpu.dot_dimension_numbers<[1], [0], [0], [1], [0, 0, 1, 1], [], []>} : vector<32x8xf32>, vector<8x4xf32>, vector<32x4xf32> -> vector<32x4xf32>
    %c0_3 = arith.constant 0 : index
    %c0_4 = arith.constant 0 : index
    %3 = vector.load %arg3[%c0_3, %c0_4] : memref<1x4xf32, #tpu.memory_space<vmem>>, vector<1x4xf32>
    %4 = vector.broadcast %3 : vector<1x4xf32> to vector<32x4xf32>
    %5 = arith.addf %2, %4 : vector<32x4xf32>
    %c0_5 = arith.constant 0 : index
    %c0_6 = arith.constant 0 : index
    %6 = vector.load %arg4[%c0_5, %c0_6] : memref<32x4xf32, #tpu.memory_space<vmem>>, vector<32x4xf32>
    tpu.vector_store %arg4[%c0_5, %c0_6], %5 {strides = array<i32>} : memref<32x4xf32, #tpu.memory_space<vmem>>, vector<32x4xf32>,
    return
  }
  func.func @transform_0(%arg0: i32) -> (i32, i32) {
    %c0_i32 = arith.constant 0 : i32
    %c0_i32_0 = arith.constant 0 : i32
    return %arg0, %c0_i32 : i32, i32
  }
  func.func @transform_1(%arg0: i32) -> (i32, i32) {
    %c0_i32 = arith.constant 0 : i32
    %c0_i32_0 = arith.constant 0 : i32
    %c0_i32_1 = arith.constant 0 : i32
    return %c0_i32, %c0_i32_0 : i32, i32
  }
  func.func @transform_2(%arg0: i32) -> (i32, i32) {
    %c0_i32 = arith.constant 0 : i32
    %c0_i32_0 = arith.constant 0 : i32
    %c0_i32_1 = arith.constant 0 : i32
    return %c0_i32, %c0_i32_0 : i32, i32
  }
  func.func @transform_3(%arg0: i32) -> (i32, i32) {
    %c0_i32 = arith.constant 0 : i32
    %c0_i32_0 = arith.constant 0 : i32
    return %arg0, %c0_i32 : i32, i32
  }
}

</mosaic_0001>

<bundles_post_ra>
// kernel: tpu_custom_call.1
= control target key start
LH: loop header
LB: loop body
LE: loop exit
PB: predicated region body
PF: predicated region fallthrough
CT: control target
= control target key end

     0   :  { %s341_s12 = smov 0   ;;  %s364_s0 = inlined_call_operand.vmem [shape: f32[64,8], index: 0, kind: input, shape index: {}]   ;;  %s365_s1 = inlined_call_operand.vmem [shape: f32[8,4], index: 1, kind: input, shape index: {}]   ;;  %s366_s2 = inlined_call_operand.vmem [shape: f32[1,4], index: 2, kind: input, shape index: {}]   ;;  %s367_s3 = inlined_call_operand.vmem [shape: f32[64,4], index: 3, kind: output, shape index: {}]  }
   0x1 LB: > { %s286_s13 = sadd.s32 4294967295, %s319_s12   ;;  %p290_p0 = scmp.ge.s32.totalorder %s319_s12, 1  ;;  %s319_s12 = sphi %s341_s12, %s13_s12  }
   0x2   : > { %p138_p1 = scmp.lt.s32.totalorder %s319_s12, 3 }
   0x4   : > { %p139_p2 = pnand %p290_p0, %p138_p1 }
   0x5   : > { %s291_s16 = sshll.u32 (!%p139_p2), %s286_s13, 2 }
   0x6   : > { %142 = sbr.rel (%p139_p2) target bundleno = 151 (0x97), region = 32  ;;  %p163_p3 = scmp.lt.s32.totalorder (!%p139_p2), %s291_s16, 7 }
   0xb   : > { %v178_v0 = vld [vmem:[%s365_s1] sm:$0xff]  ;;  %s369_s16 = smov (!%p163_p3, %s291_s16), 7  ;;  %vm183_vm0 = vcmask 64512   ;;  %vm225_vm1 = vcmask 31744  }
   0xc   : > { %302 = vmatpush.msra.mxu2 %v178_v0  ;;  %303 = vmatpush.msra.mxu3 %v178_v0  ;;  %s292_s17 = sshll.u32 %s369_s16, 3  ;;  %v312_v5 = vld [vmem:[%s366_s2] ss:$0 sm:$0xff] }
   0xd   : > { %211 = vmatpush.msra.mxu0 %v178_v0  ;;  %301 = vmatpush.msra.mxu1 %v178_v0  ;;  %s166_s20 = scalar_lea.vmem %s364_s0, %s292_s17  ;;  %s172_s25 = scalar_lea.vmem %s367_s3, %s292_s17 }
   0xe   : > { %v176_v1 = vld [vmem:[%s166_s20 + $0x10] sm:$0xff]  ;;  %v177_v2 = vld [vmem:[%s166_s20 + $0x18] sm:$0xff]  ;;  %v174_v3 = vld [vmem:[%s166_s20] sm:$0xff] }
   0xf   : > { %297 = vmatmul.msk.f32.vlgmr.msra.gmra.mxu2 %vm183_vm0, %v176_v1  ;;  %298 = vmatmul.msk.f32.vlgmr.msra.gmra.mxu3 %vm183_vm0, %v177_v2  ;;  %v175_v4 = vld [vmem:[%s166_s20 + $0x8] sm:$0xff] }
  0x10   : > { %295 = vmatmul.msk.f32.vlgmr.msra.gmra.mxu0 %vm183_vm0, %v174_v3  ;;  %296 = vmatmul.msk.f32.vlgmr.msra.gmra.mxu1 %vm183_vm0, %v175_v4 }
  0x8d   : > { %v213_v6 = vpop.f32.mrf.mxu0  ;;  %v216_v7 = vpop.f32.mrf.mxu1 }
  0x8e   : > { %v214_v8 = vadd.f32 %v312_v5, %v213_v6  ;;  %v217_v9 = vadd.f32 %v312_v5, %v216_v7 }
  0x90   : > { %226 = vst.msk [vmem:[%s172_s25] sm:$0xff] %vm225_vm1, %v214_v8 }
  0x91   : > { %227 = vst.msk [vmem:[%s172_s25 + $0x8] sm:$0xff] %vm225_vm1, %v217_v9 }
  0x92   : > { %v219_v10 = vpop.f32.mrf.mxu2  ;;  %v222_v11 = vpop.f32.mrf.mxu3 }
  0x93   : > { %v220_v12 = vadd.f32 %v312_v5, %v219_v10  ;;  %v223_v13 = vadd.f32 %v312_v5, %v222_v11 }
  0x95   : > { %228 = vst.msk [vmem:[%s172_s25 + $0x10] sm:$0xff] %vm225_vm1, %v220_v12 }
  0x96   : > { %229 = vst.msk [vmem:[%s172_s25 + $0x18] sm:$0xff] %vm225_vm1, %v223_v13 }
  0x97 PF: > { %s13_s12 = sadd.s32 1, %s319_s12  }
  0x98   : > { %p10_p4 = scmp.ge.s32.totalorder %s13_s12, 4  }
  0x9a   :  { %12 = sbr.rel (!%p10_p4) target bundleno = 1 (0x1), region = 62 }

</bundles_post_ra>
